<compile_context>
chip_gen: v5e
topology: v5e:2x2
jax: 0.10.0
libtpu: 0.0.40
codegen_flags: <defaults>
</compile_context>

<pallas_src>
import jax
import jax.numpy as jnp
from jax.experimental import pallas as pl
from jax.experimental.pallas import tpu as pltpu


def _copy_kernel(x_ref, o_ref):
    # x_ref: (1, tb, H) tile of hidden[i]; o_ref: (1, tb, H) half-slice of out[i//2].
    # Full-tile, lane-aligned copy (used only when H % 128 == 0).
    o_ref[...] = x_ref[...]


def _concat_kernel(x_ref, o_ref):
    # x_ref: (2, tb, H) -> the (hidden[2l], hidden[2l+1]) pair as one block.
    # o_ref: (1, tb, 2H) output tile.
    h = x_ref.shape[-1]
    o_ref[:, :, :h] = x_ref[0:1]
    o_ref[:, :, h:] = x_ref[1:2]  # lane-misaligned if H % 128 != 0 (correct, perf-only)


def _choose_batch_tile(b: int, h: int, itemsize: int) -> int:
    """Largest batch tile that keeps double-buffered in+out VMEM under budget."""
    # per-step live VMEM ~ 2 buffers * (2*tb*h input + tb*2h output) * itemsize
    budget = 8 * 1024 * 1024  # 8 MiB: safe headroom on v7x's 32 MiB scoped default
    sublane = 32 // itemsize  # fp32 -> 8, bf16 -> 16, int8 -> 32 (sublane packing)
    if 8 * b * h * itemsize <= budget:
        return b  # whole batch fits comfortably per step
    for tb in range(b, 0, -1):
        if b % tb == 0 and tb % sublane == 0 and 8 * tb * h * itemsize <= budget:
            return tb
    return b  # no aligned divisor fits: fall back to full batch (compiler handles it)


def reduce_state(hidden_state: jax.Array) -> jax.Array:
    """hidden_state: (2*L, B, H) -> (L, B, 2*H), matching ReduceState.forward."""
    d0, b, h = hidden_state.shape
    assert d0 % 2 == 0, "leading dim must be even (num_layers * num_directions)"
    num_layers = d0 // 2
    itemsize = jnp.dtype(hidden_state.dtype).itemsize
    tb = _choose_batch_tile(b, h, itemsize)
    out_shape = jax.ShapeDtypeStruct((num_layers, b, 2 * h), hidden_state.dtype)

    # NOTE: for tiny tensors (< ~1 MB of traffic) plain jnp.concatenate is just
    # as fast; the kernel exists for large encoder states.

    if h % 128 == 0:
        # Pure-copy path: every step writes a full, 128-lane-dense (1, tb, H) tile.
        grid = (2 * num_layers, b // tb)
        return pl.pallas_call(
            _copy_kernel,
            out_shape=out_shape,
            grid_spec=pl.GridSpec(
                grid=grid,
                in_specs=[pl.BlockSpec((1, tb, h), lambda i, j: (i, j, 0))],
                # out block index along last dim: even i -> first half, odd i -> second half
                out_specs=pl.BlockSpec((1, tb, h), lambda i, j: (i // 2, j, i % 2)),
            ),
            compiler_params=pltpu.CompilerParams(
                dimension_semantics=("parallel", "parallel"),
            ),
        )(hidden_state)

    # Fused path: one contiguous (2, tb, H) input DMA per step, split in-body.
    grid = (num_layers, b // tb)
    return pl.pallas_call(
        _concat_kernel,
        out_shape=out_shape,
        grid_spec=pl.GridSpec(
            grid=grid,
            in_specs=[pl.BlockSpec((2, tb, h), lambda l, j: (l, j, 0))],
            out_specs=pl.BlockSpec((1, tb, 2 * h), lambda l, j: (l, j, 0)),
        ),
        compiler_params=pltpu.CompilerParams(
            dimension_semantics=("parallel", "parallel"),
        ),
    )(hidden_state)


def reduce_state_ref(hidden_state: jax.Array) -> jax.Array:
    """Pure-JAX reference matching the PyTorch _fix_enc_hidden."""
    return jnp.concatenate([hidden_state[0::2], hidden_state[1::2]], axis=2)


if __name__ == "__main__":
    key = jax.random.PRNGKey(0)

    # Primary test (matches the module's implied small shapes):
    # num_layers=2 bidirectional -> leading dim 4; batch=4; hidden=32.
    hidden_state = jax.random.normal(key, (4, 4, 32), dtype=jnp.float32)
    out = jax.block_until_ready(reduce_state(hidden_state))
    ref = reduce_state_ref(hidden_state)
    assert out.shape == ref.shape == (2, 4, 64), out.shape
    assert jnp.array_equal(out, ref), "Pallas output mismatch vs reference (concat path)"

    # Secondary test exercising the lane-dense pure-copy path (H % 128 == 0).
    key2 = jax.random.PRNGKey(1)
    hidden_state2 = jax.random.normal(key2, (4, 8, 128), dtype=jnp.float32)
    out2 = jax.block_until_ready(reduce_state(hidden_state2))
    ref2 = reduce_state_ref(hidden_state2)
    assert out2.shape == ref2.shape == (2, 8, 256), out2.shape
    assert jnp.array_equal(out2, ref2), "Pallas output mismatch vs reference (copy path)"

    print("KERNEL_OK")
</pallas_src>

<mosaic_0001>
module attributes {stable_mosaic.version = 11 : i64} {
  func.func @_concat_kernel(%arg0: i32, %arg1: i32, %arg2: memref<2x4x32xf32, #tpu.memory_space<vmem>>, %arg3: memref<1x4x64xf32, #tpu.memory_space<vmem>>) attributes {dimension_semantics = [#tpu.dimension_semantics<parallel>, #tpu.dimension_semantics<parallel>], iteration_bounds = array<i64: 2, 1>, scalar_prefetch = 0 : i64, scratch_operands = 0 : i64, tpu.core_type = #tpu.core_type<tc>, window_params = [{transform_indices = @transform_0, window_bounds = array<i64: 2, 4, 32>}, {transform_indices = @transform_1, window_bounds = array<i64: 1, 4, 64>}]} {
    %c0 = arith.constant 0 : index
    %c0_0 = arith.constant 0 : index
    %c0_1 = arith.constant 0 : index
    %0 = vector.load %arg2[%c0, %c0_0, %c0_1] : memref<2x4x32xf32, #tpu.memory_space<vmem>>, vector<1x4x32xf32>
    %c0_2 = arith.constant 0 : index
    %c0_3 = arith.constant 0 : index
    %c0_4 = arith.constant 0 : index
    %1 = vector.load %arg3[%c0_2, %c0_3, %c0_4] : memref<1x4x64xf32, #tpu.memory_space<vmem>>, vector<1x4x32xf32>
    tpu.vector_store %arg3[%c0_2, %c0_3, %c0_4], %0 {strides = array<i32>} : memref<1x4x64xf32, #tpu.memory_space<vmem>>, vector<1x4x32xf32>,
    %c1 = arith.constant 1 : index
    %c0_5 = arith.constant 0 : index
    %c0_6 = arith.constant 0 : index
    %2 = vector.load %arg2[%c1, %c0_5, %c0_6] : memref<2x4x32xf32, #tpu.memory_space<vmem>>, vector<1x4x32xf32>
    %c0_7 = arith.constant 0 : index
    %c0_8 = arith.constant 0 : index
    %c32 = arith.constant 32 : index
    %3 = vector.load %arg3[%c0_7, %c0_8, %c32] : memref<1x4x64xf32, #tpu.memory_space<vmem>>, vector<1x4x32xf32>
    tpu.vector_store %arg3[%c0_7, %c0_8, %c32], %2 {strides = array<i32>} : memref<1x4x64xf32, #tpu.memory_space<vmem>>, vector<1x4x32xf32>,
    return
  }
  func.func @transform_0(%arg0: i32, %arg1: i32) -> (i32, i32, i32) {
    %c0_i32 = arith.constant 0 : i32
    %c0_i32_0 = arith.constant 0 : i32
    return %arg0, %arg1, %c0_i32 : i32, i32, i32
  }
  func.func @transform_1(%arg0: i32, %arg1: i32) -> (i32, i32, i32) {
    %c0_i32 = arith.constant 0 : i32
    %c0_i32_0 = arith.constant 0 : i32
    return %arg0, %arg1, %c0_i32 : i32, i32, i32
  }
}

</mosaic_0001>

<bundles_post_ra>
// kernel: tpu_custom_call.1
= control target key start
LH: loop header
LB: loop body
LE: loop exit
PB: predicated region body
PF: predicated region fallthrough
CT: control target
= control target key end

     0   :  { %6 = vsyncpa [#allocation3], 0  ;;  %s593_s0 = inlined_call_operand.hbm [shape: f32[4,4,32], index: 0, kind: input, shape index: {}]   ;;  %s594_s1 = inlined_call_operand.hbm [shape: f32[2,4,64], index: 1, kind: output, shape index: {}]  }
   0x1   :  { %8 = vsyncpa [#allocation3 + $0x1], 0 }
   0x2   :  { %9 = vsyncpa [#allocation4], 0 }
   0x3   :  { %11 = vsyncpa [#allocation4 + $0x1], 0  ;;  %s472_s6 = smov 0   ;;  %s474_s7 = smov 0  }
   0x4   :  { %s476_s8 = smov 0   ;;  %s478_s9 = smov 0  }
   0x5   :  { %s480_s10 = smov 0   ;;  %s482_s11 = smov 0  }
   0x6 LB: > { %s264_s12 = sadd.s32 4294967295, %s457_s11   ;;  %s265_s13 = sadd.s32 4294967294, %s457_s11   ;;  %s457_s11 = sphi %s482_s11, %s17_s11   ;;  %s453_s10 = sphi %s480_s10, %s603_s10   ;;  %s449_s9 = sphi %s478_s9, %s602_s9   ;;  %s445_s8 = sphi %s476_s8, %s601_s8   ;;  %s441_s7 = sphi %s474_s7, %s600_s7   ;;  %s437_s6 = sphi %s472_s6, %s599_s6  }
   0x7   : > { %s29_s14 = sadd.s32 1, %s453_s10  ;;  %s38_s15 = sadd.s32 1, %s445_s8 }
   0x8   : > { %p31_p0 = scmp.ge.s32.totalorder %s29_s14, 2  ;;  %p45_p1 = scmp.ne.s32.totalorder %s445_s8, %s441_s7 }
   0x9   : > { %p46_p2 = scmp.eq.s32.totalorder %s457_s11, 0  ;;  %p51_p3 = scmp.ne.s32.totalorder %s441_s7, %s437_s6 }
   0xa   : > { %s605_s14 = smov (%p31_p0, %s29_s14), 0  ;;  %p52_p5 = scmp.eq.s32.totalorder %s264_s12, 0 }
   0xb   : > { %p513_p4 = por %p46_p2, %p45_p1  ;;  %s33_s17 = ssub.s32 %s453_s10, %s605_s14 }
   0xc   : > { %p77_p6 = scmp.eq.s32.totalorder %s264_s12, 1  ;;  %p36_p7 = scmp.eq.s32.totalorder %s33_s17, 0 }
   0xd   : > { %p519_p8 = por %p52_p5, %p51_p3  ;;  %p83_p10 = scmp.eq.s32.totalorder %s265_s13, 1 }
   0xe   : > { %p523_p9 = por %p77_p6, %p45_p1  ;;  %p267_p12 = scmp.ge.s32.totalorder %s457_s11, 2 }
   0xf   : > { %s528_s20 = scalar_select %p36_p7, %s445_s8, %s38_s15  }
  0x10   : > { %p530_p11 = por %p83_p10, %p51_p3  ;;  %p292_p13 = scmp.lt.s32.totalorder %s457_s11, 2 }
  0x11   : > { %s103_s22 = sand.u32 1, %s445_s8   ;;  %s279_s24 = sshll.u32 %s453_s10, 3 }
  0x12   : > { %s268_s23 = sshll.u32 %s103_s22, 3  ;;  %s113_s27 = scalar_lea.hbm %s593_s0, %s279_s24 }
  0x13   : > { %s107_s28 = scalar_lea.vmem [#allocation2], %s268_s23  ;;  %s114_s30 = sshll.u32 %s113_s27, 4  ;;  %s115_s30 = int_to_ptr.hbm [resolvable:$true] %s114_s30 }
  0x14   : > { %s116_s29 = sshll.u32 %s107_s28, 4  ;;  %p285_p0 = pnand %p292_p13, %p513_p4  ;;  %s117_s29 = int_to_ptr.vmem [resolvable:$true] %s116_s29 }
  0x15   : > { %p271_p1 = scmp.ge.s32.totalorder %s457_s11, 1  ;;  %s104_s2 = scalar_lea.sflag [#allocation3], %s103_s22 }
  0x16   : > { %s459_s3 = smov 64   ;;  %s460_s4 = smov 4  }
  0x17   : > { %287 = dma.hbm_to_vmem [thread:$0]  (!%p285_p0), %s115_s30, 128, %s117_s29, %s104_s2, %s459_s3, %s459_s3, %s460_s4  }
  0x18   : > { %p124_p2 = scmp.lt.s32.totalorder %s457_s11, 3 }
  0x1a   : > { %p125_p3 = pnand %p271_p1, %p124_p2 }
  0x1b   : > { %s546_s5 = sand.u32 (!%p125_p3), 1, %s441_s7  }
  0x1c   : > { %128 = sbr.rel (%p125_p3) target bundleno = 154 (0x9a), region = 24  ;;  %s272_s12 = sshll.u32 (!%p125_p3), %s546_s5, 3 }
  0x1d   : > { %s131_s13 = scalar_lea.sflag (!%p125_p3), [#allocation3], %s546_s5  ;;  %s134_s15 = scalar_lea.vmem (!%p125_p3), [#allocation2], %s272_s12 }
  0x21   : > { %428 = dma.done.wait (%p519_p8), %s131_s13, 128  }
  0x22   : > { %430 = vsyncadd (%p519_p8), %s131_s13, 4294967168  ;;  %s273_s16 = sshll.u32 %s546_s5, 2  ;;  %vm156_vm0 = vcmask 257024   ;;  %v155_v0 = vld [vmem:[%s134_s15] sm:$0xf]  ;;  %s461_s22 = smov 32  }
  0x23   : > { %v274_v1 = vld [vmem:[%s134_s15 + $0x4] sm:$0xf]  ;;  %s153_s17 = scalar_lea.vmem [#allocation5], %s273_s16  ;;  %s276_s23 = sshll.u32 %s449_s9, 2  ;;  %vm164_vm1 = vcmask 519424  }
  0x24   : > { %157 = vst.msk [vmem:[%s153_s17] sm:$0xf] %vm156_vm0, %v155_v0  ;;  %161 = vrot.lane.b32.xlu0 %v274_v1, %s461_s22  ;;  %s178_s26 = scalar_lea.hbm %s594_s1, %s276_s23  ;;  %s180_s27 = sshll.u32 %s153_s17, 4  ;;  %s181_s27 = int_to_ptr.vmem [resolvable:$true] %s180_s27 }
  0x25   : > { %s182_s18 = sshll.u32 %s178_s26, 4  ;;  %s167_s28 = scalar_lea.sflag [#allocation4], %s546_s5  ;;  %s183_s18 = int_to_ptr.hbm [resolvable:$true] %s182_s18 }
  0x26   : > { %s389_s29 = sshra.s32 %s183_s18, 4  ;;  %s395_s3 = scalar_lea.hbm %s594_s1, 8  ;;  %s390_s29 = int_to_ptr.hbm [resolvable:$true] %s389_s29 }
  0x27   : > { %s391_s30 = scalar_lea.hbm %s390_s29, 4  ;;  %p396_p7 = scmp.lt.s32.totalorder %s390_s29, %s594_s1 }
  0x28   : > { %p392_p4 = scmp.ne.s32.totalorder %s390_s29, %s391_s30  ;;  %p397_p8 = scmp.lt.s32.totalorder %s395_s3, %s391_s30 }
  0x2a   : > { %p393_p5 = pnand %p392_p4, %p523_p9  ;;  %p398_p10 = por %p397_p8, %p396_p7 }
  0x2c   : > { %p394_p6 = pneg %p393_p5 }
  0x2e   : > { %p399_p13 = pnand %p398_p10, %p394_p6 }
  0x96   : > { %v162_v2 = vpop.permute.xlu0 %161 }
  0x97   : > { %165 = vst.msk [vmem:[%s153_s17] sm:$0xf] %vm164_vm1, %v162_v2 }
  0x98   : > { %402 = shalt.err (!%p399_p13)
}
  0x99   : > { %282 = dma.vmem_to_hbm [thread:$0]  (%p523_p9), %s181_s27, 64, %s183_s18, %s167_s28  }
  0x9a PF: > { %s194_s5 = sand.u32 1, %s437_s6   ;;  %p289_p0 = pnand %p267_p12, %p530_p11 }
  0x9b   : > { %s195_s13 = scalar_lea.sflag [#allocation4], %s194_s5 }
  0x9c   : > { %p290_p1 = pneg %p289_p0 }
  0x9e   : > { %432 = dma.done.wait (%p290_p1), %s195_s13, 64  }
  0x9f   : > { %434 = vsyncadd (%p290_p1), %s195_s13, 4294967232  ;;  %s17_s11 = sadd.s32 1, %s457_s11   ;;  %s599_s6 = smov %s441_s7 }
  0xa0   : > { %p14_p2 = scmp.ge.s32.totalorder %s17_s11, 4   ;;  %s600_s7 = smov %s445_s8 }
  0xa1   : > { %s601_s8 = smov %s528_s20  ;;  %s602_s9 = smov %s453_s10 }
  0xa2   : > { %s603_s10 = smov %s605_s14  ;;  %16 = sbr.rel (!%p14_p2) target bundleno = 6 (0x6), region = 70 }
  0xa7   :  { %201 = vsyncpa [#allocation3], 1 }
  0xa8   :  { %203 = vsyncpa [#allocation3 + $0x1], 1 }
  0xa9   :  { %204 = vsyncpa [#allocation4], 1 }
  0xaa   :  { %206 = vsyncpa [#allocation4 + $0x1], 1 }

</bundles_post_ra>
